<compile_context>
chip_gen: v7x
topology: tpu7x:2x2x1
jax: 0.10.0
libtpu: 0.0.40
codegen_flags: <defaults>
</compile_context>

<pallas_src>
import jax
import jax.numpy as jnp
from jax import lax
from jax.experimental import pallas as pl
from jax.experimental.pallas import tpu as pltpu

D_IN, D_H1, D_H2, D_OUT = 30, 40, 50, 10

# Large batch tiles amortize the ~0.35us/grid-step overhead.  Even at 2048 rows
# the double-buffered footprint (2048*30 f32 in + 2048*10 f32 out, x2 buffers,
# plus <10 KB of resident weights) is well under 1 MiB -- nowhere near the VMEM
# limit on v5e/v6e (128 MiB) or v7x (64 MiB).
TILE_B_MAX = 2048


def mlp_kernel(x_ref, w1_ref, b1_ref, w2_ref, b2_ref, w3_ref, b3_ref, o_ref):
    # Cast f32 x -> bf16 on the VPU (free slot) instead of a wrapper-side cast.
    xb = x_ref[...].astype(jnp.bfloat16)                      # (tile_b, 30)
    # Layer 1: (40, 30) . (tile_b, 30)^T -> (40, tile_b); bf16 MXU, f32 accumulate.
    h1 = lax.dot_general(w1_ref[...], xb,
                         dimension_numbers=(((1,), (1,)), ((), ())),
                         preferred_element_type=jnp.float32)
    h1 = jnp.maximum(h1 + b1_ref[...], 0.0)                   # bias bcast along lanes
    # Layer 2: (50, 40) @ (40, tile_b) -> (50, tile_b)
    h2 = jnp.dot(w2_ref[...], h1.astype(jnp.bfloat16),
                 preferred_element_type=jnp.float32)
    h2 = jnp.maximum(h2 + b2_ref[...], 0.0)
    # Layer 3: (10, 50) @ (50, tile_b) -> (10, tile_b); sim_net's l3 DOES end in ReLU.
    h3 = jnp.dot(w3_ref[...], h2.astype(jnp.bfloat16),
                 preferred_element_type=jnp.float32)
    h3 = jnp.maximum(h3 + b3_ref[...], 0.0)
    o_ref[...] = h3.astype(o_ref.dtype)                       # lane-dense store


def _pick_tile_b(B):
    if B <= 256:
        # One block covering the whole batch: block dims == array dims (always
        # legal, no padding needed even for tiny/odd B).
        return B
    # Keep >=2 grid steps so v7x can shard the parallel batch axis across its
    # two TensorCores, and round to a multiple of 128 so the batch (lane) dim of
    # the output block stays dense and legal.
    half = (((B + 1) // 2) + 127) // 128 * 128
    return min(TILE_B_MAX, half)


def sim_net_forward(x, params):
    """x: (B, 30) f32.  params: packed by pack_params().  Returns (B, 10) f32."""
    w1, b1, w2, b2, w3, b3 = params
    B = x.shape[0]
    tile_b = _pick_tile_b(B)
    n_tiles = pl.cdiv(B, tile_b)

    # Constant block index -> Pallas keeps weights/biases resident in VMEM
    # (no re-DMA across grid steps).
    resident = lambda shape: pl.BlockSpec(shape, lambda i: (0, 0))

    flops = 2 * B * (D_IN * D_H1 + D_H1 * D_H2 + D_H2 * D_OUT)
    bytes_accessed = (B * D_IN * 4 + B * D_OUT * 4
                      + (D_IN * D_H1 + D_H1 * D_H2 + D_H2 * D_OUT) * 2
                      + (D_H1 + D_H2 + D_OUT) * 4)

    out_t = pl.pallas_call(
        mlp_kernel,
        out_shape=jax.ShapeDtypeStruct((D_OUT, B), jnp.float32),
        grid=(n_tiles,),
        in_specs=[
            pl.BlockSpec((tile_b, D_IN), lambda i: (i, 0)),   # x tiled over batch
            resident((D_H1, D_IN)), resident((D_H1, 1)),
            resident((D_H2, D_H1)), resident((D_H2, 1)),
            resident((D_OUT, D_H2)), resident((D_OUT, 1)),
        ],
        out_specs=pl.BlockSpec((D_OUT, tile_b), lambda i: (0, i)),  # batch on lanes
        compiler_params=pltpu.CompilerParams(
            # parallel batch axis lets v7x shard grid steps across its 2 TCs;
            # harmless on single-TC v5e/v6e.
            dimension_semantics=("parallel",)),
        cost_estimate=pl.CostEstimate(
            flops=flops, transcendentals=0, bytes_accessed=bytes_accessed),
    )(x, w1, b1, w2, b2, w3, b3)

    # (10, B) -> (B, 10): tiny relayout (40 B/row) done once by XLA; far cheaper
    # than the lane-masked stores a (tile_b, 10) kernel output block would cost.
    return out_t.T


def init_params(key):
    """f32 parameters in PyTorch (out, in) layout, matching sim_net.__init__."""
    k = jax.random.split(key, 6)
    w1 = jax.random.normal(k[0], (D_H1, D_IN), jnp.float32)       # torch.randn(40, 30)
    lim1 = 1.0 / jnp.sqrt(D_IN)
    b1 = jax.random.uniform(k[1], (D_H1,), jnp.float32, -lim1, lim1)
    lim2 = 1.0 / jnp.sqrt(D_H1)
    w2 = jax.random.uniform(k[2], (D_H2, D_H1), jnp.float32, -lim2, lim2)
    b2 = jax.random.uniform(k[3], (D_H2,), jnp.float32, -lim2, lim2)
    lim3 = 1.0 / jnp.sqrt(D_H2)
    w3 = jax.random.uniform(k[4], (D_OUT, D_H2), jnp.float32, -lim3, lim3)
    b3 = jax.random.uniform(k[5], (D_OUT,), jnp.float32, -lim3, lim3)
    return (w1, b1, w2, b2, w3, b3)


def pack_params(params_f32):
    """One-time layout glue, hoisted out of the forward path: weights keep the
    PyTorch (out, in) layout but are cast to bf16 for the MXU; biases become
    (out, 1) f32 columns so they broadcast along the lane (batch) axis.
    NOTE: bf16 weights introduce ~0.5%/layer quantization error vs the f32
    PyTorch numerics (bounded by the loose f32 check in __main__)."""
    w1, b1, w2, b2, w3, b3 = params_f32
    return (w1.astype(jnp.bfloat16), b1[:, None],
            w2.astype(jnp.bfloat16), b2[:, None],
            w3.astype(jnp.bfloat16), b3[:, None])


if __name__ == "__main__":
    key = jax.random.PRNGKey(0)
    pkey, xkey = jax.random.split(key)
    params_f32 = init_params(pkey)
    kparams = pack_params(params_f32)

    B = 8
    x = jax.random.normal(xkey, (B, D_IN), jnp.float32)

    out = jax.block_until_ready(sim_net_forward(x, kparams))
    assert out.shape == (B, D_OUT)

    # Reference 1: identical bf16-matmul / f32-accumulate semantics as the kernel
    # (tight tolerance; only accumulation-order differences remain).
    w1b, b1c, w2b, b2c, w3b, b3c = kparams
    h = jnp.maximum(jnp.dot(x.astype(jnp.bfloat16), w1b.T,
                            preferred_element_type=jnp.float32) + b1c.T, 0.0)
    h = jnp.maximum(jnp.dot(h.astype(jnp.bfloat16), w2b.T,
                            preferred_element_type=jnp.float32) + b2c.T, 0.0)
    ref_bf16 = jnp.maximum(jnp.dot(h.astype(jnp.bfloat16), w3b.T,
                                   preferred_element_type=jnp.float32) + b3c.T, 0.0)
    assert jnp.allclose(out, ref_bf16, atol=1e-3, rtol=1e-3), \
        float(jnp.max(jnp.abs(out - ref_bf16)))

    # Reference 2: full f32 PyTorch numerics (loose tolerance; documents/bounds
    # the bf16 weight & activation quantization error).
    w1, b1, w2, b2, w3, b3 = params_f32
    h = jnp.maximum(x @ w1.T + b1, 0.0)
    h = jnp.maximum(h @ w2.T + b2, 0.0)
    ref_f32 = jnp.maximum(h @ w3.T + b3, 0.0)
    assert jnp.allclose(out, ref_f32, atol=0.25, rtol=0.05), \
        float(jnp.max(jnp.abs(out - ref_f32)))

    print("KERNEL_OK")
</pallas_src>

<mosaic_0001>
module attributes {stable_mosaic.version = 11 : i64} {
  func.func @mlp_kernel(%arg0: i32, %arg1: memref<8x30xf32, #tpu.memory_space<vmem>>, %arg2: memref<40x30xbf16, #tpu.memory_space<vmem>>, %arg3: memref<40x1xf32, #tpu.memory_space<vmem>>, %arg4: memref<50x40xbf16, #tpu.memory_space<vmem>>, %arg5: memref<50x1xf32, #tpu.memory_space<vmem>>, %arg6: memref<10x50xbf16, #tpu.memory_space<vmem>>, %arg7: memref<10x1xf32, #tpu.memory_space<vmem>>, %arg8: memref<10x8xf32, #tpu.memory_space<vmem>>) attributes {dimension_semantics = [#tpu.dimension_semantics<parallel>], iteration_bounds = array<i64: 1>, scalar_prefetch = 0 : i64, scratch_operands = 0 : i64, tpu.core_type = #tpu.core_type<tc>, window_params = [{transform_indices = @transform_0, window_bounds = array<i64: 8, 30>}, {pipeline_mode = #tpu.pipeline_mode<synchronous>, transform_indices = @transform_1, window_bounds = array<i64: 40, 30>}, {pipeline_mode = #tpu.pipeline_mode<synchronous>, transform_indices = @transform_2, window_bounds = array<i64: 40, 1>}, {pipeline_mode = #tpu.pipeline_mode<synchronous>, transform_indices = @transform_3, window_bounds = array<i64: 50, 40>}, {pipeline_mode = #tpu.pipeline_mode<synchronous>, transform_indices = @transform_4, window_bounds = array<i64: 50, 1>}, {pipeline_mode = #tpu.pipeline_mode<synchronous>, transform_indices = @transform_5, window_bounds = array<i64: 10, 50>}, {pipeline_mode = #tpu.pipeline_mode<synchronous>, transform_indices = @transform_6, window_bounds = array<i64: 10, 1>}, {transform_indices = @transform_7, window_bounds = array<i64: 10, 8>}]} {
    %c0 = arith.constant 0 : index
    %c0_0 = arith.constant 0 : index
    %0 = vector.load %arg1[%c0, %c0_0] : memref<8x30xf32, #tpu.memory_space<vmem>>, vector<8x30xf32>
    %1 = arith.truncf %0 : vector<8x30xf32> to vector<8x30xbf16>
    %c0_1 = arith.constant 0 : index
    %c0_2 = arith.constant 0 : index
    %2 = vector.load %arg2[%c0_1, %c0_2] : memref<40x30xbf16, #tpu.memory_space<vmem>>, vector<40x30xbf16>
    %cst = arith.constant dense<0.000000e+00> : vector<40x8xf32>
    %3 = tpu.matmul %2, %1, %cst {dimension_numbers = #tpu.dot_dimension_numbers<[1], [1], [0], [0], [0, 0, 1, 0], [], []>} : vector<40x30xbf16>, vector<8x30xbf16>, vector<40x8xf32> -> vector<40x8xf32>
    %c0_3 = arith.constant 0 : index
    %c0_4 = arith.constant 0 : index
    %4 = vector.load %arg3[%c0_3, %c0_4] : memref<40x1xf32, #tpu.memory_space<vmem>>, vector<40x1xf32>
    %5 = vector.broadcast %4 : vector<40x1xf32> to vector<40x8xf32>
    %6 = arith.addf %3, %5 : vector<40x8xf32>
    %cst_5 = arith.constant 0.000000e+00 : f32
    %7 = vector.broadcast %cst_5 : f32 to vector<40x8xf32>
    %8 = arith.maximumf %6, %7 : vector<40x8xf32>
    %c0_6 = arith.constant 0 : index
    %c0_7 = arith.constant 0 : index
    %9 = vector.load %arg4[%c0_6, %c0_7] : memref<50x40xbf16, #tpu.memory_space<vmem>>, vector<50x40xbf16>
    %10 = arith.truncf %8 : vector<40x8xf32> to vector<40x8xbf16>
    %cst_8 = arith.constant dense<0.000000e+00> : vector<50x8xf32>
    %11 = tpu.matmul %9, %10, %cst_8 {dimension_numbers = #tpu.dot_dimension_numbers<[1], [0], [0], [1], [0, 0, 1, 1], [], []>} : vector<50x40xbf16>, vector<40x8xbf16>, vector<50x8xf32> -> vector<50x8xf32>
    %c0_9 = arith.constant 0 : index
    %c0_10 = arith.constant 0 : index
    %12 = vector.load %arg5[%c0_9, %c0_10] : memref<50x1xf32, #tpu.memory_space<vmem>>, vector<50x1xf32>
    %13 = vector.broadcast %12 : vector<50x1xf32> to vector<50x8xf32>
    %14 = arith.addf %11, %13 : vector<50x8xf32>
    %cst_11 = arith.constant 0.000000e+00 : f32
    %15 = vector.broadcast %cst_11 : f32 to vector<50x8xf32>
    %16 = arith.maximumf %14, %15 : vector<50x8xf32>
    %c0_12 = arith.constant 0 : index
    %c0_13 = arith.constant 0 : index
    %17 = vector.load %arg6[%c0_12, %c0_13] : memref<10x50xbf16, #tpu.memory_space<vmem>>, vector<10x50xbf16>
    %18 = arith.truncf %16 : vector<50x8xf32> to vector<50x8xbf16>
    %cst_14 = arith.constant dense<0.000000e+00> : vector<10x8xf32>
    %19 = tpu.matmul %17, %18, %cst_14 {dimension_numbers = #tpu.dot_dimension_numbers<[1], [0], [0], [1], [0, 0, 1, 1], [], []>} : vector<10x50xbf16>, vector<50x8xbf16>, vector<10x8xf32> -> vector<10x8xf32>
    %c0_15 = arith.constant 0 : index
    %c0_16 = arith.constant 0 : index
    %20 = vector.load %arg7[%c0_15, %c0_16] : memref<10x1xf32, #tpu.memory_space<vmem>>, vector<10x1xf32>
    %21 = vector.broadcast %20 : vector<10x1xf32> to vector<10x8xf32>
    %22 = arith.addf %19, %21 : vector<10x8xf32>
    %cst_17 = arith.constant 0.000000e+00 : f32
    %23 = vector.broadcast %cst_17 : f32 to vector<10x8xf32>
    %24 = arith.maximumf %22, %23 : vector<10x8xf32>
    %c0_18 = arith.constant 0 : index
    %c0_19 = arith.constant 0 : index
    %25 = vector.load %arg8[%c0_18, %c0_19] : memref<10x8xf32, #tpu.memory_space<vmem>>, vector<10x8xf32>
    tpu.vector_store %arg8[%c0_18, %c0_19], %24 {strides = array<i32>} : memref<10x8xf32, #tpu.memory_space<vmem>>, vector<10x8xf32>,
    return
  }
  func.func @transform_0(%arg0: i32) -> (i32, i32) {
    %c0_i32 = arith.constant 0 : i32
    %c0_i32_0 = arith.constant 0 : i32
    return %arg0, %c0_i32 : i32, i32
  }
  func.func @transform_1(%arg0: i32) -> (i32, i32) {
    %c0_i32 = arith.constant 0 : i32
    %c0_i32_0 = arith.constant 0 : i32
    %c0_i32_1 = arith.constant 0 : i32
    return %c0_i32, %c0_i32_0 : i32, i32
  }
  func.func @transform_2(%arg0: i32) -> (i32, i32) {
    %c0_i32 = arith.constant 0 : i32
    %c0_i32_0 = arith.constant 0 : i32
    %c0_i32_1 = arith.constant 0 : i32
    return %c0_i32, %c0_i32_0 : i32, i32
  }
  func.func @transform_3(%arg0: i32) -> (i32, i32) {
    %c0_i32 = arith.constant 0 : i32
    %c0_i32_0 = arith.constant 0 : i32
    %c0_i32_1 = arith.constant 0 : i32
    return %c0_i32, %c0_i32_0 : i32, i32
  }
  func.func @transform_4(%arg0: i32) -> (i32, i32) {
    %c0_i32 = arith.constant 0 : i32
    %c0_i32_0 = arith.constant 0 : i32
    %c0_i32_1 = arith.constant 0 : i32
    return %c0_i32, %c0_i32_0 : i32, i32
  }
  func.func @transform_5(%arg0: i32) -> (i32, i32) {
    %c0_i32 = arith.constant 0 : i32
    %c0_i32_0 = arith.constant 0 : i32
    %c0_i32_1 = arith.constant 0 : i32
    return %c0_i32, %c0_i32_0 : i32, i32
  }
  func.func @transform_6(%arg0: i32) -> (i32, i32) {
    %c0_i32 = arith.constant 0 : i32
    %c0_i32_0 = arith.constant 0 : i32
    %c0_i32_1 = arith.constant 0 : i32
    return %c0_i32, %c0_i32_0 : i32, i32
  }
  func.func @transform_7(%arg0: i32) -> (i32, i32) {
    %c0_i32 = arith.constant 0 : i32
    %c0_i32_0 = arith.constant 0 : i32
    return %c0_i32, %arg0 : i32, i32
  }
}

</mosaic_0001>

<bundles_post_ra>
// kernel: tpu_custom_call.1
= control target key start
LH: loop header
LB: loop body
LE: loop exit
PB: predicated region body
PF: predicated region fallthrough
CT: control target
= control target key end

     0   :  { %v477_v0 = vmov 0.0   ;;  %vm77_vm0 = vcmask 244736   ;;  %vm478_vm1 = vmmov 0   ;;  %v479_v3 = vmov 0   ;;  %s616_s0 = inlined_call_operand.vmem [shape: f32[8,30], index: 0, kind: input, shape index: {}]   ;;  %s617_s1 = inlined_call_operand.vmem [shape: bf16[40,30], index: 1, kind: input, shape index: {}]   ;;  %s618_s2 = inlined_call_operand.vmem [shape: f32[40,1], index: 2, kind: input, shape index: {}]   ;;  %s619_s4 = inlined_call_operand.vmem [shape: f32[50,1], index: 4, kind: input, shape index: {}]   ;;  %s620_s6 = inlined_call_operand.vmem [shape: f32[10,1], index: 6, kind: input, shape index: {}]   ;;  %s621_s3 = inlined_call_operand.vmem [shape: bf16[50,40], index: 3, kind: input, shape index: {}]   ;;  %s622_s5 = inlined_call_operand.vmem [shape: bf16[10,50], index: 5, kind: input, shape index: {}]   ;;  %s623_s7 = inlined_call_operand.vmem [shape: f32[10,8], index: 7, kind: output, shape index: {}]  }
   0x1   :  { %423 = vmatprep.subr.bf16.mxu0 %v477_v0  ;;  %v27_v1 = vld [vmem:[%s616_s0] sm:$0xff]  ;;  %425 = vmatprep.mubr.msk.bf16.mxu0 %vm478_vm1, %v477_v0  ;;  %v36_v6 = vld [vmem:[%s618_s2 + $0x10] sm:$0xff]  ;;  %v35_v7 = vld [vmem:[%s618_s2 + $0x8] sm:$0xff]  ;;  %vm221_vm2 = vcmask 326656   ;;  %vm234_vm3 = vcmask 1043456   ;;  %vm336_vm4 = vcmask 1040384  }
   0x2   :  { %v28_v2 = vpack.c.bf16 %v27_v1, %v27_v1  ;;  %467 = vset.pattern.permute.xlu0 %v479_v3  ;;  %468 = vset.pattern.permute.xlu1 %v479_v3  ;;  %v34_v5 = vld [vmem:[%s618_s2] sm:$0xff]  ;;  %v37_v8 = vld [vmem:[%s618_s2 + $0x18] sm:$0xff]  ;;  %v162_v12 = vld [vmem:[%s619_s4 + $0x8] sm:$0xff]  ;;  %vm332_vm5 = vcmask 408576   ;;  %vm383_vm6 = vcmask 64512   ;;  %vm385_vm7 = vcmask 58368  }
   0x3   :  { %41 = vperm.xlu0 %467, %v34_v5   ;;  %51 = vperm.xlu1 %468, %v36_v6   ;;  %v469_v9 = vld [vmem:[%s617_s1] sm:$0xff]   ;;  %v163_v13 = vld [vmem:[%s619_s4 + $0x10] sm:$0xff]  ;;  %v470_v14 = vld [vmem:[%s617_s1 + $0x8] sm:$0xff]  }
   0x4   :  { %v88_v4 = vsel %vm77_vm0, %v28_v2, 0  ;;  %v38_v10 = vld [vmem:[%s618_s2 + $0x20] sm:$0xff]  ;;  %v164_v15 = vld [vmem:[%s619_s4 + $0x18] sm:$0xff]  ;;  %v166_v17 = vld [vmem:[%s619_s4 + $0x28] sm:$0xff] }
   0x5   :  { %424 = vmatpush3.bf16.xpose.msra.mxu0 %v88_v4  ;;  %v161_v11 = vld [vmem:[%s619_s4] sm:$0xff]  ;;  %v167_v18 = vld [vmem:[%s619_s4 + $0x30] sm:$0x3]  ;;  %v316_v21 = vld [vmem:[%s620_s6 + $0x8] sm:$0x3] }
   0x6   :  { %v165_v16 = vld [vmem:[%s619_s4 + $0x20] sm:$0xff]  ;;  %v471_v19 = vld [vmem:[%s617_s1 + $0x10] ss:$0 sps:$4 sm:$0xff]   ;;  %v473_v54 = vld [vmem:[%s621_s3 + $0x8] sm:$0xff]  }
   0x7   :  { %46 = vperm.xlu0 %467, %v35_v7   ;;  %56 = vperm.xlu1 %468, %v37_v8   ;;  %v315_v20 = vld [vmem:[%s620_s6] sm:$0xff]  ;;  %v474_v55 = vld [vmem:[%s621_s3 + $0x10] sm:$0xff]   ;;  %v475_v56 = vld [vmem:[%s621_s3 + $0x18] ss:$0 sps:$4 sm:$0x11]  }
   0x8   :  { %v472_v22 = vld [vmem:[%s621_s3] sm:$0xff]  }
   0x9   :  { %443 = vmatprep.mubr.msk.bf16.mxu1 %vm221_vm2, %v472_v22 }
   0xb   :  { %61 = vperm.xlu0 %467, %v38_v10   ;;  %170 = vperm.xlu1 %468, %v161_v11  }
   0xc   :  { %426 = vmatmul.mubr.msk.bf16.vlgmr.msra.gmra.mrb[0].mxu0 %vm77_vm0, %v469_v9 }
   0xd   :  { %429 = vmatprep.mubr.msk.bf16.mxu0 %vm478_vm1, %v477_v0 }
   0xf   :  { %175 = vperm.xlu0 %467, %v162_v12   ;;  %180 = vperm.xlu1 %468, %v163_v13  }
  0x13   :  { %185 = vperm.xlu0 %467, %v164_v15   ;;  %190 = vperm.xlu1 %468, %v165_v16  }
  0x14   :  { %430 = vmatmul.mubr.msk.bf16.gmra.mrb[4].mxu0 %vm77_vm0, %v470_v14 }
  0x15   :  { %433 = vmatprep.mubr.msk.bf16.mxu0 %vm478_vm1, %v477_v0 }
  0x17   :  { %195 = vperm.xlu0 %467, %v166_v17   ;;  %200 = vperm.xlu1 %468, %v167_v18  }
  0x1b   :  { %319 = vperm.xlu0 %467, %v315_v20   ;;  %324 = vperm.xlu1 %468, %v316_v21  }
  0x1c   :  { %434 = vmatmul.mubr.msk.bf16.gmra.mrb[8].mxu0 %vm77_vm0, %v471_v19 }
  0x82   :  { %v42_v23 = vpop.permute.xlu0 %41  ;;  %v52_v31 = vpop.permute.xlu1 %51 }
  0x86   :  { %v47_v27 = vpop.permute.xlu0 %46  ;;  %v57_v38 = vpop.permute.xlu1 %56 }
  0x8a   :  { %v62_v45 = vpop.permute.xlu0 %61  ;;  %v171_v57 = vpop.permute.xlu1 %170 }
  0x8e   :  { %v176_v58 = vpop.permute.xlu0 %175  ;;  %v181_v59 = vpop.permute.xlu1 %180 }
  0x92   :  { %v186_v61 = vpop.permute.xlu0 %185  ;;  %v191_v1 = vpop.permute.xlu1 %190 }
  0x96   :  { %v201_v12 = vpop.permute.xlu1 %200  ;;  %v196_v19 = vpop.permute.xlu0 %195 }
  0xdf   :  { %v124_v24 = vpop.f32.mrb[0].mxu0 }
  0xe0   :  { %v125_v25 = vadd.f32 %v124_v24, %v42_v23  ;;  %v427_v26 = vpop.f32.mrb[1].mxu0 }
  0xe1   :  { %v127_v28 = vpop.f32.mrb[2].mxu0 }
  0xe2   :  { %v128_v29 = vadd.f32 %v127_v28, %v47_v27  ;;  %v428_v30 = vpop.f32.mrb[3].mxu0  ;;  %v146_v32 = vmax.f32 %v125_v25, 0.0  ;;  %v476_v28 = vld [vmem:[%s622_s5] sm:$0x1f]  }
  0xe4   :  { %v147_v33 = vmax.f32 %v128_v29, 0.0  ;;  %v320_v29 = vpop.permute.xlu0 %319 }
  0xe6   :  { %v158_v34 = vpack.c.bf16 %v147_v33, %v146_v32  ;;  %v325_v33 = vpop.permute.xlu1 %324 }
  0xe7   :  { %v132_v35 = vpop.f32.mrb[4].mxu0 }
  0xe8   :  { %v133_v36 = vadd.f32 %v132_v35, %v52_v31  ;;  %v431_v37 = vpop.f32.mrb[5].mxu0  ;;  %437 = vmatprep.subr.bf16.mxu1 %v158_v34 }
  0xe9   :  { %v135_v39 = vpop.f32.mrb[6].mxu0  ;;  %438 = vmatpush3.bf16.msra.mxu1 %v158_v34 }
  0xea   :  { %v136_v40 = vadd.f32 %v135_v39, %v57_v38  ;;  %v432_v41 = vpop.f32.mrb[7].mxu0  ;;  %v148_v42 = vmax.f32 %v133_v36, 0.0 }
  0xec   :  { %v149_v43 = vmax.f32 %v136_v40, 0.0 }
  0xee   :  { %v159_v44 = vpack.c.bf16 %v149_v43, %v148_v42 }
  0xef   :  { %v140_v46 = vpop.f32.mrb[8].mxu0 }
  0xf0   :  { %v141_v47 = vadd.f32 %v140_v46, %v62_v45  ;;  %v435_v48 = vpop.f32.mrb[9].mxu0  ;;  %439 = vmatprep.subr.bf16.mxu1 %v159_v44 }
  0xf1   :  { %v143_v49 = vpop.f32.mrb[10].mxu0  ;;  %440 = vmatpush3.bf16.msra.mxu1 %v159_v44 }
  0xf2   :  { %v150_v50 = vmax.f32 %v141_v47, 0.0  ;;  %v436_v51 = vpop.f32.mrb[11].mxu0 }
  0xf4   :  { %v160_v52 = vpack.c.bf16 %v150_v50, %v150_v50 }
  0xf6   :  { %463 = vmatprep.subr.msk.bf16.mxu1 %vm234_vm3, %v160_v52  ;;  %v236_v53 = vsel %vm234_vm3, %v160_v52, 0 }
  0xf7   :  { %442 = vmatpush3.bf16.msra.mxu1 %v236_v53 }
  0xf8   :  { %451 = vmatprep.subr.bf16.mxu1 %v477_v0 }
  0xfa   :  { %444 = vmatmul.mubr.msk.bf16.vlgmr.msra.gmra.mrb[0].mxu1 %vm221_vm2, %v473_v54 }
  0xfb   :  { %447 = vmatprep.mubr.msk.bf16.mxu1 %vm221_vm2, %v474_v55 }
 0x102   :  { %448 = vmatmul.mubr.msk.bf16.gmra.mrb[4].mxu1 %vm221_vm2, %v475_v56 }
 0x103   :  { %459 = vmatprep.mubr.msk.bf16.mxu1 %vm478_vm1, %v477_v0 }
 0x1cd   :  { %v445_v60 = vpop.f32.mrb[0].mxu1 }
 0x1ce   :  { %v281_v62 = vadd.f32 %v445_v60, %v181_v59  ;;  %v272_v63 = vpop.f32.mrb[1].mxu1 }
 0x1cf   :  { %v273_v2 = vadd.f32 %v272_v63, %v171_v57  ;;  %v446_v3 = vpop.f32.mrb[2].mxu1 }
 0x1d0   :  { %v284_v4 = vadd.f32 %v446_v3, %v186_v61  ;;  %v275_v5 = vpop.f32.mrb[3].mxu1  ;;  %v304_v7 = vmax.f32 %v281_v62, 0.0 }
 0x1d1   :  { %v276_v6 = vadd.f32 %v275_v5, %v176_v58  ;;  %v302_v9 = vmax.f32 %v273_v2, 0.0 }
 0x1d2   :  { %v305_v8 = vmax.f32 %v284_v4, 0.0 }
 0x1d3   :  { %v303_v10 = vmax.f32 %v276_v6, 0.0 }
 0x1d4   :  { %v312_v11 = vpack.c.bf16 %v305_v8, %v304_v7 }
 0x1d5   :  { %v311_v13 = vpack.c.bf16 %v303_v10, %v302_v9  ;;  %v449_v14 = vpop.f32.mrb[4].mxu1 }
 0x1d6   :  { %v297_v15 = vadd.f32 %v449_v14, %v201_v12  ;;  %v288_v16 = vpop.f32.mrb[5].mxu1 }
 0x1d7   :  { %v289_v17 = vadd.f32 %v288_v16, %v191_v1  ;;  %v450_v18 = vpop.f32.mrb[6].mxu1  ;;  %452 = vmatpush3.bf16.msra.mxu1 %v311_v13 }
 0x1d8   :  { %v291_v20 = vpop.f32.mrb[7].mxu1  ;;  %453 = vmatprep.subr.bf16.mxu1 %v477_v0  ;;  %v308_v22 = vmax.f32 %v297_v15, 0.0 }
 0x1d9   :  { %v292_v21 = vadd.f32 %v291_v20, %v196_v19  ;;  %v306_v23 = vmax.f32 %v289_v17, 0.0 }
 0x1da   :  { %v314_v26 = vpack.c.bf16 %v308_v22, %v308_v22 }
 0x1db   :  { %v307_v24 = vmax.f32 %v292_v21, 0.0  ;;  %454 = vmatpush3.bf16.msra.mxu1 %v312_v11 }
 0x1dc   :  { %455 = vmatprep.subr.bf16.mxu1 %v477_v0  ;;  %v338_v27 = vsel %vm336_vm4, %v314_v26, 0 }
 0x1dd   :  { %v313_v25 = vpack.c.bf16 %v307_v24, %v306_v23 }
 0x1df   :  { %456 = vmatpush3.bf16.msra.mxu1 %v313_v25 }
 0x1e0   :  { %457 = vmatprep.subr.bf16.mxu1 %v477_v0 }
 0x1e3   :  { %458 = vmatpush3.bf16.msra.mxu1 %v338_v27 }
 0x1e6   :  { %460 = vmatmul.mubr.msk.bf16.vlgmr.msra.gmra.mrb[8].mxu1 %vm332_vm5, %v476_v28 }
 0x2b9   :  { %v374_v30 = vpop.f32.mrb[8].mxu1 }
 0x2ba   :  { %v375_v31 = vadd.f32 %v374_v30, %v320_v29  ;;  %v461_v32 = vpop.f32.mrb[9].mxu1 }
 0x2bb   :  { %v377_v34 = vpop.f32.mrb[10].mxu1 }
 0x2bc   :  { %v381_v35 = vmax.f32 %v375_v31, 0.0  ;;  %v378_v36 = vadd.f32 %v377_v34, %v325_v33  ;;  %v462_v37 = vpop.f32.mrb[11].mxu1 }
 0x2be   :  { %384 = vst.msk [vmem:[%s623_s7] sm:$0xff] %vm383_vm6, %v381_v35  ;;  %v382_v0 = vmax.f32 %v378_v36, 0.0 }
 0x2c0   :  { %386 = vst.msk [vmem:[%s623_s7 + $0x8] sm:$0x3] %vm385_vm7, %v382_v0 }

</bundles_post_ra>
